<compile_context>
chip_gen: v7x
topology: tpu7x:2x2x1
jax: 0.10.0
libtpu: 0.0.40
codegen_flags: <defaults>
</compile_context>

<pallas_src>
import jax
import jax.numpy as jnp
from jax.experimental import pallas as pl
from jax.experimental.pallas import tpu as pltpu

LANE = 128      # lane width (last dim of a vreg)
SUBLANE = 8     # f32 sublane count
MAX_TB = 512    # batch tile upper bound (85%+ of HBM roofline per sweep data)


def _round_up(n: int, m: int) -> int:
    return ((n + m - 1) // m) * m


def mlp_deep_kernel(x_ref, w_ref, b_ref, o_ref):
    """Fused Linear->tanh->Linear->tanh->Linear on one (TB, D) batch tile.

    x_ref : (TB, D)    bf16  padded input rows
    w_ref : (3, D, D)  bf16  padded, layer-stacked weights (resident over grid)
    b_ref : (3, 1, D)  f32   padded, layer-stacked biases
    o_ref : (TB, D)    f32   padded logits
    """
    x = x_ref[...]
    # fc0 -> tanh  (dropout is identity at inference)
    h = jnp.dot(x, w_ref[0], preferred_element_type=jnp.float32)
    h = jnp.tanh(h + b_ref[0])                       # f32 bias-add / tanh
    # fc1 -> tanh
    h = jnp.dot(h.astype(w_ref.dtype), w_ref[1], preferred_element_type=jnp.float32)
    h = jnp.tanh(h + b_ref[1])
    # fc2 (output logits)
    out = jnp.dot(h.astype(w_ref.dtype), w_ref[2], preferred_element_type=jnp.float32)
    o_ref[...] = (out + b_ref[2]).astype(o_ref.dtype)


def pack_params(w0, b0, w1, b1, w2, b2, compute_dtype=jnp.bfloat16):
    """Pad each weight/bias to a common lane-aligned D and stack per layer.

    Weights are (in_features, out_features) (transpose of torch Linear.weight).
    Zero padding is exact: padded input lanes are zero, padded hidden lanes are
    tanh(0 + 0) = 0, and padded output lanes are sliced away by the wrapper.
    """
    dims = (w0.shape[0], w0.shape[1], w1.shape[1], w2.shape[1])
    D = max(_round_up(d, LANE) for d in dims)

    def pad_w(w):
        out = jnp.zeros((D, D), compute_dtype)
        return out.at[: w.shape[0], : w.shape[1]].set(w.astype(compute_dtype))

    def pad_b(b):
        b = jnp.asarray(b, jnp.float32).reshape(1, -1)
        out = jnp.zeros((1, D), jnp.float32)
        return out.at[:, : b.shape[1]].set(b)

    w_stack = jnp.stack([pad_w(w0), pad_w(w1), pad_w(w2)])   # (3, D, D) bf16
    b_stack = jnp.stack([pad_b(b0), pad_b(b1), pad_b(b2)])   # (3, 1, D) f32
    return w_stack, b_stack


def mlp_classifier_deep(x, w_stack, b_stack, num_classes):
    """x: (B, 1, input_size) -> logits (B, num_classes)."""
    B = x.shape[0]
    D = w_stack.shape[-1]
    compute_dtype = w_stack.dtype

    # squeeze(1) + pad batch to sublane multiple, features to lane-aligned D.
    x2d = x.reshape(B, x.shape[-1])
    TB = min(MAX_TB, _round_up(B, SUBLANE))
    Bp = _round_up(B, TB)
    xp = jnp.zeros((Bp, D), compute_dtype)
    xp = xp.at[:B, : x2d.shape[1]].set(x2d.astype(compute_dtype))

    bytes_accessed = (
        xp.size * xp.dtype.itemsize
        + w_stack.size * w_stack.dtype.itemsize
        + b_stack.size * b_stack.dtype.itemsize
        + Bp * D * 4
    )
    cost = pl.CostEstimate(
        flops=2 * Bp * D * D * 3,
        transcendentals=2 * Bp * D,
        bytes_accessed=bytes_accessed,
    )

    out_padded = pl.pallas_call(
        mlp_deep_kernel,
        out_shape=jax.ShapeDtypeStruct((Bp, D), jnp.float32),
        grid_spec=pltpu.PrefetchScalarGridSpec(
            num_scalar_prefetch=0,
            grid=(Bp // TB,),
            in_specs=[
                pl.BlockSpec((TB, D), lambda i: (i, 0)),       # x tile streams
                pl.BlockSpec((3, D, D), lambda i: (0, 0, 0)),  # weights resident
                pl.BlockSpec((3, 1, D), lambda i: (0, 0, 0)),  # biases resident
            ],
            out_specs=pl.BlockSpec((TB, D), lambda i: (i, 0)),
        ),
        compiler_params=pltpu.CompilerParams(
            dimension_semantics=("parallel",),
        ),
        cost_estimate=cost,
    )(xp, w_stack, b_stack)

    # Lane-dense kernel output; slice back to the real logits in plain JAX.
    return out_padded[:B, :num_classes]


def init_linear_params(key, fan_in, fan_out):
    """Deterministic init mimicking torch.nn.Linear (uniform +-1/sqrt(fan_in)).

    Returned weight is (fan_in, fan_out), i.e. W.T relative to PyTorch layout.
    """
    kw, kb = jax.random.split(key)
    bound = 1.0 / jnp.sqrt(jnp.float32(fan_in))
    w = jax.random.uniform(kw, (fan_in, fan_out), jnp.float32, -bound, bound)
    b = jax.random.uniform(kb, (1, fan_out), jnp.float32, -bound, bound)
    return w, b


def _ref_forward(x2d, w0, b0, w1, b1, w2, b2, cast_dtype=None):
    """Pure-JAX reference. If cast_dtype is set, matmul operands are rounded to
    it (emulating the kernel's bf16 MXU inputs) but accumulate in true f32."""
    def c(a):
        return a if cast_dtype is None else a.astype(cast_dtype).astype(jnp.float32)

    hi = jax.lax.Precision.HIGHEST
    h = jnp.tanh(jnp.dot(c(x2d), c(w0), precision=hi) + b0)
    h = jnp.tanh(jnp.dot(c(h), c(w1), precision=hi) + b1)
    return jnp.dot(c(h), c(w2), precision=hi) + b2


if __name__ == "__main__":
    # Small shapes consistent with the module's forward: (batch, 1, input_size)
    batch = 8
    input_size = 32
    hidden_size = 64
    hidden_size_2 = 32
    num_classes = 16
    # TODO(synk): dropout is a no-op here (inference mode); training-mode dropout
    # would need pltpu.prng_seed / prng_random_bits masking inside the kernel.

    key = jax.random.PRNGKey(0)
    kx, k0, k1, k2 = jax.random.split(key, 4)

    x = jax.random.normal(kx, (batch, 1, input_size), jnp.float32)
    w0, b0 = init_linear_params(k0, input_size, hidden_size)
    w1, b1 = init_linear_params(k1, hidden_size, hidden_size_2)
    w2, b2 = init_linear_params(k2, hidden_size_2, num_classes)

    w_stack, b_stack = pack_params(w0, b0, w1, b1, w2, b2)

    out = mlp_classifier_deep(x, w_stack, b_stack, num_classes)
    out = jax.block_until_ready(out)
    assert out.shape == (batch, num_classes)

    x2d = x.reshape(batch, input_size)
    # Tight check vs. a reference that also rounds matmul operands to bf16
    # (same inputs the MXU sees, f32 accumulation in both).
    ref_bf16 = _ref_forward(x2d, w0, b0, w1, b1, w2, b2, cast_dtype=jnp.bfloat16)
    assert jnp.allclose(out, ref_bf16, atol=2e-3, rtol=2e-3)
    # Loose check vs. the full-f32 PyTorch-equivalent forward (bf16 operand
    # rounding is the only deviation).
    ref_f32 = _ref_forward(x2d, w0, b0, w1, b1, w2, b2)
    assert jnp.allclose(out, ref_f32, atol=5e-2, rtol=5e-2)

    print("KERNEL_OK")
</pallas_src>

<mosaic_0001>
module attributes {stable_mosaic.version = 11 : i64} {
  func.func @mlp_deep_kernel(%arg0: i32, %arg1: memref<8x128xbf16, #tpu.memory_space<vmem>>, %arg2: memref<3x128x128xbf16, #tpu.memory_space<vmem>>, %arg3: memref<3x1x128xf32, #tpu.memory_space<vmem>>, %arg4: memref<8x128xf32, #tpu.memory_space<vmem>>) attributes {dimension_semantics = [#tpu.dimension_semantics<parallel>], iteration_bounds = array<i64: 1>, scalar_prefetch = 0 : i64, scratch_operands = 0 : i64, tpu.core_type = #tpu.core_type<tc>, window_params = [{transform_indices = @transform_0, window_bounds = array<i64: 8, 128>}, {pipeline_mode = #tpu.pipeline_mode<synchronous>, transform_indices = @transform_1, window_bounds = array<i64: 3, 128, 128>}, {pipeline_mode = #tpu.pipeline_mode<synchronous>, transform_indices = @transform_2, window_bounds = array<i64: 3, 1, 128>}, {transform_indices = @transform_3, window_bounds = array<i64: 8, 128>}]} {
    %c0 = arith.constant 0 : index
    %c0_0 = arith.constant 0 : index
    %0 = vector.load %arg1[%c0, %c0_0] : memref<8x128xbf16, #tpu.memory_space<vmem>>, vector<8x128xbf16>
    %c0_1 = arith.constant 0 : index
    %c0_2 = arith.constant 0 : index
    %c0_3 = arith.constant 0 : index
    %1 = vector.load %arg2[%c0_1, %c0_2, %c0_3] : memref<3x128x128xbf16, #tpu.memory_space<vmem>>, vector<1x128x128xbf16>
    %2 = vector.shape_cast %1 : vector<1x128x128xbf16> to vector<128x128xbf16>
    %cst = arith.constant dense<0.000000e+00> : vector<8x128xf32>
    %3 = tpu.matmul %0, %2, %cst {dimension_numbers = #tpu.dot_dimension_numbers<[1], [0], [0], [1], [0, 0, 1, 1], [], []>} : vector<8x128xbf16>, vector<128x128xbf16>, vector<8x128xf32> -> vector<8x128xf32>
    %c0_4 = arith.constant 0 : index
    %c0_5 = arith.constant 0 : index
    %c0_6 = arith.constant 0 : index
    %4 = vector.load %arg3[%c0_4, %c0_5, %c0_6] : memref<3x1x128xf32, #tpu.memory_space<vmem>>, vector<1x1x128xf32>
    %5 = vector.shape_cast %4 : vector<1x1x128xf32> to vector<1x128xf32>
    %6 = vector.broadcast %5 : vector<1x128xf32> to vector<8x128xf32>
    %7 = arith.addf %3, %6 : vector<8x128xf32>
    %8 = math.tanh %7 : vector<8x128xf32>
    %9 = arith.truncf %8 : vector<8x128xf32> to vector<8x128xbf16>
    %c1 = arith.constant 1 : index
    %c0_7 = arith.constant 0 : index
    %c0_8 = arith.constant 0 : index
    %10 = vector.load %arg2[%c1, %c0_7, %c0_8] : memref<3x128x128xbf16, #tpu.memory_space<vmem>>, vector<1x128x128xbf16>
    %11 = vector.shape_cast %10 : vector<1x128x128xbf16> to vector<128x128xbf16>
    %cst_9 = arith.constant dense<0.000000e+00> : vector<8x128xf32>
    %12 = tpu.matmul %9, %11, %cst_9 {dimension_numbers = #tpu.dot_dimension_numbers<[1], [0], [0], [1], [0, 0, 1, 1], [], []>} : vector<8x128xbf16>, vector<128x128xbf16>, vector<8x128xf32> -> vector<8x128xf32>
    %c1_10 = arith.constant 1 : index
    %c0_11 = arith.constant 0 : index
    %c0_12 = arith.constant 0 : index
    %13 = vector.load %arg3[%c1_10, %c0_11, %c0_12] : memref<3x1x128xf32, #tpu.memory_space<vmem>>, vector<1x1x128xf32>
    %14 = vector.shape_cast %13 : vector<1x1x128xf32> to vector<1x128xf32>
    %15 = vector.broadcast %14 : vector<1x128xf32> to vector<8x128xf32>
    %16 = arith.addf %12, %15 : vector<8x128xf32>
    %17 = math.tanh %16 : vector<8x128xf32>
    %18 = arith.truncf %17 : vector<8x128xf32> to vector<8x128xbf16>
    %c2 = arith.constant 2 : index
    %c0_13 = arith.constant 0 : index
    %c0_14 = arith.constant 0 : index
    %19 = vector.load %arg2[%c2, %c0_13, %c0_14] : memref<3x128x128xbf16, #tpu.memory_space<vmem>>, vector<1x128x128xbf16>
    %20 = vector.shape_cast %19 : vector<1x128x128xbf16> to vector<128x128xbf16>
    %cst_15 = arith.constant dense<0.000000e+00> : vector<8x128xf32>
    %21 = tpu.matmul %18, %20, %cst_15 {dimension_numbers = #tpu.dot_dimension_numbers<[1], [0], [0], [1], [0, 0, 1, 1], [], []>} : vector<8x128xbf16>, vector<128x128xbf16>, vector<8x128xf32> -> vector<8x128xf32>
    %c2_16 = arith.constant 2 : index
    %c0_17 = arith.constant 0 : index
    %c0_18 = arith.constant 0 : index
    %22 = vector.load %arg3[%c2_16, %c0_17, %c0_18] : memref<3x1x128xf32, #tpu.memory_space<vmem>>, vector<1x1x128xf32>
    %23 = vector.shape_cast %22 : vector<1x1x128xf32> to vector<1x128xf32>
    %24 = vector.broadcast %23 : vector<1x128xf32> to vector<8x128xf32>
    %25 = arith.addf %21, %24 : vector<8x128xf32>
    %c0_19 = arith.constant 0 : index
    %c0_20 = arith.constant 0 : index
    %26 = vector.load %arg4[%c0_19, %c0_20] : memref<8x128xf32, #tpu.memory_space<vmem>>, vector<8x128xf32>
    tpu.vector_store %arg4[%c0_19, %c0_20], %25 {strides = array<i32>} : memref<8x128xf32, #tpu.memory_space<vmem>>, vector<8x128xf32>,
    return
  }
  func.func @transform_0(%arg0: i32) -> (i32, i32) {
    %c0_i32 = arith.constant 0 : i32
    %c0_i32_0 = arith.constant 0 : i32
    return %arg0, %c0_i32 : i32, i32
  }
  func.func @transform_1(%arg0: i32) -> (i32, i32, i32) {
    %c0_i32 = arith.constant 0 : i32
    %c0_i32_0 = arith.constant 0 : i32
    %c0_i32_1 = arith.constant 0 : i32
    %c0_i32_2 = arith.constant 0 : i32
    return %c0_i32, %c0_i32_0, %c0_i32_1 : i32, i32, i32
  }
  func.func @transform_2(%arg0: i32) -> (i32, i32, i32) {
    %c0_i32 = arith.constant 0 : i32
    %c0_i32_0 = arith.constant 0 : i32
    %c0_i32_1 = arith.constant 0 : i32
    %c0_i32_2 = arith.constant 0 : i32
    return %c0_i32, %c0_i32_0, %c0_i32_1 : i32, i32, i32
  }
  func.func @transform_3(%arg0: i32) -> (i32, i32) {
    %c0_i32 = arith.constant 0 : i32
    %c0_i32_0 = arith.constant 0 : i32
    return %arg0, %c0_i32 : i32, i32
  }
}

</mosaic_0001>

<bundles_post_ra>
// kernel: tpu_custom_call.1
= control target key start
LH: loop header
LB: loop body
LE: loop exit
PB: predicated region body
PF: predicated region fallthrough
CT: control target
= control target key end

     0   :  { %8 = vsyncpa [#allocation3], 0  ;;  %s733_s0 = inlined_call_operand.hbm [shape: bf16[8,128], index: 0, kind: input, shape index: {}]   ;;  %s734_s1 = inlined_call_operand.hbm [shape: bf16[3,128,128], index: 1, kind: input, shape index: {}]   ;;  %s735_s2 = inlined_call_operand.vmem [shape: f32[3,1,128], index: 2, kind: input, shape index: {}]   ;;  %s736_s3 = inlined_call_operand.hbm [shape: f32[8,128], index: 3, kind: output, shape index: {}]  }
   0x1   :  { %9 = vsyncpa [#allocation6], 0 }
   0x2   :  { %10 = vsyncpa [#allocation4], 0  ;;  %s624_s12 = smov [#allocation2]   ;;  %s625_s14 = smov [#allocation5]  }
   0x3   :  { %s17_s13 = sshll.u32 %s624_s12, 4  ;;  %s26_s15 = sshll.u32 %s625_s14, 4  ;;  %s18_s13 = int_to_ptr.vmem [resolvable:$true] %s17_s13  ;;  %s651_s15 = int_to_ptr.vmem [resolvable:$true] %s26_s15 }
   0x4   :  { %s552_s18 = scalar_lea.hbm %s733_s0, 64 }
   0x5   :  { %p553_p0 = scmp.ne.s32.totalorder %s733_s0, %s552_s18  ;;  %p556_p1 = scmp.lt.u32.totalorder %s552_s18, %s733_s0 }
   0x7   :  { %p558_p2 = pnand %p556_p1, %p553_p0 }
   0x9   :  { %561 = shalt.err (!%p558_p2)
}
   0xa   :  { %s562_s23 = scalar_lea.vmem %s18_s13, 64  ;;  %p567_p4 = scmp.lt.s32.totalorder %s18_s13, %s18_s13 }
   0xb   :  { %p563_p3 = scmp.ne.s32.totalorder %s18_s13, %s562_s23  ;;  %p568_p5 = scmp.lt.s32.totalorder %s562_s23, %s562_s23 }
   0xd   :  { %p569_p6 = por %p568_p5, %p567_p4 }
   0xf   :  { %p570_p7 = pnand %p569_p6, %p563_p3 }
  0x11   :  { %573 = shalt.err (!%p570_p7)
}
  0x12   :  { %20 = dma.hbm_to_vmem [thread:$0]  %s733_s0, 64, %s18_s13, [#allocation3]  }
  0x13   :  { %s574_s28 = scalar_lea.hbm %s734_s1, 3072 }
  0x14   :  { %p575_p8 = scmp.ne.s32.totalorder %s734_s1, %s574_s28  ;;  %p578_p9 = scmp.lt.u32.totalorder %s574_s28, %s734_s1 }
  0x16   :  { %p580_p10 = pnand %p578_p9, %p575_p8 }
  0x18   :  { %583 = shalt.err (!%p580_p10)
}
  0x19   :  { %s584_s6 = scalar_lea.vmem %s651_s15, 3072  ;;  %p589_p12 = scmp.lt.s32.totalorder %s651_s15, %s651_s15 }
  0x1a   :  { %p585_p11 = scmp.ne.s32.totalorder %s651_s15, %s584_s6  ;;  %p590_p13 = scmp.lt.s32.totalorder %s584_s6, %s584_s6 }
  0x1c   :  { %p591_p0 = por %p590_p13, %p589_p12 }
  0x1e   :  { %p592_p1 = pnand %p591_p0, %p585_p11 }
  0x20   :  { %595 = shalt.err (!%p592_p1)
}
  0x21   :  { %s626_s0 = smov 64   ;;  %s627_s7 = smov 4  }
  0x22   :  { %32 = dma.hbm_to_vmem [thread:$0]  %s734_s1, 3072, %s651_s15, [#allocation6], %s626_s0, %s626_s0, %s627_s7  }
  0x23   :  { %618 = dma.done.wait [#allocation3], 64  }
  0x24   :  { %619 = vsyncadd [#allocation3], 4294967232 }
  0x25   :  { %620 = dma.done.wait [#allocation6], 3072  }
  0x26   :  { %621 = vsyncadd [#allocation6], 4294964224  ;;  %v628_v0 = vmov 0.0   ;;  %vm629_vm0 = vmmov 0   ;;  %v524_v1 = vld [vmem:[#allocation5] sm:$0xff]   ;;  %v525_v2 = vld [vmem:[#allocation5 + $0x8] sm:$0xff]  }
  0x27   :  { %457 = vmatprep.subr.bf16.mxu0 %v628_v0  ;;  %473 = vmatprep.mubr.msk.bf16.mxu0 %vm629_vm0, %v628_v0  ;;  %v526_v3 = vld [vmem:[#allocation5 + $0x10] sm:$0xff]   ;;  %v532_v4 = vld [vmem:[#allocation5 + $0x40] sm:$0xff]   ;;  %v527_v5 = vld [vmem:[#allocation5 + $0x18] sm:$0xff]   ;;  %s630_s15 = smov [#allocation7]  }
  0x28   :  { %477 = vmatprep.subr.bf16.mxu1 %v628_v0  ;;  %493 = vmatprep.mubr.msk.bf16.mxu1 %vm629_vm0, %v628_v0  ;;  %v533_v6 = vld [vmem:[#allocation5 + $0x48] sm:$0xff]   ;;  %v528_v7 = vld [vmem:[#allocation5 + $0x20] sm:$0xff]   ;;  %v534_v8 = vld [vmem:[#allocation5 + $0x50] sm:$0xff]   ;;  %s391_s16 = sshll.u32 %s630_s15, 4  ;;  %s392_s16 = int_to_ptr.vmem [resolvable:$true] %s391_s16 }
  0x29   :  { %458 = vmatpush3.bf16.msra.mxu0 %v524_v1  ;;  %478 = vmatpush3.bf16.msra.mxu1 %v532_v4  ;;  %v529_v9 = vld [vmem:[#allocation5 + $0x28] sm:$0xff]   ;;  %v535_v10 = vld [vmem:[#allocation5 + $0x58] sm:$0xff]   ;;  %v530_v11 = vld [vmem:[#allocation5 + $0x30] sm:$0xff]   ;;  %s596_s17 = scalar_lea.vmem %s392_s16, 128  ;;  %p601_p3 = scmp.lt.s32.totalorder %s392_s16, %s392_s16 }
  0x2a   :  { %459 = vmatprep.subr.bf16.mxu0 %v628_v0  ;;  %479 = vmatprep.subr.bf16.mxu1 %v628_v0  ;;  %v531_v12 = vld [vmem:[#allocation5 + $0x38] sm:$0xff]   ;;  %v536_v14 = vld [vmem:[#allocation5 + $0x60] sm:$0xff]   ;;  %v537_v15 = vld [vmem:[#allocation5 + $0x68] sm:$0xff]   ;;  %p597_p2 = scmp.ne.s32.totalorder %s392_s16, %s596_s17  ;;  %p602_p4 = scmp.lt.s32.totalorder %s596_s17, %s596_s17 }
  0x2b   :  { %v42_v13 = vld [vmem:[#allocation2] sm:$0xf]  ;;  %v538_v16 = vld [vmem:[#allocation5 + $0x70] sm:$0xff]   ;;  %v540_v18 = vld [vmem:[#allocation5 + $0x80] sm:$0xff]  }
  0x2c   :  { %v539_v17 = vld [vmem:[#allocation5 + $0x78] sm:$0xff]   ;;  %v541_v19 = vld [vmem:[#allocation5 + $0x88] sm:$0xff]   ;;  %v542_v20 = vld [vmem:[#allocation5 + $0x90] sm:$0xff]   ;;  %p603_p5 = por %p602_p4, %p601_p3 }
  0x2d   :  { %460 = vmatpush3.bf16.msra.mxu0 %v525_v2  ;;  %480 = vmatpush3.bf16.msra.mxu1 %v533_v6  ;;  %v543_v21 = vld [vmem:[#allocation5 + $0x98] sm:$0xff]   ;;  %v544_v30 = vld [vmem:[#allocation5 + $0xa0] sm:$0xff]   ;;  %v545_v31 = vld [vmem:[#allocation5 + $0xa8] sm:$0xff]  }
  0x2e   :  { %461 = vmatprep.subr.bf16.mxu0 %v628_v0  ;;  %481 = vmatprep.subr.bf16.mxu1 %v628_v0  ;;  %v401_v22 = vld [vmem:[%s735_s2] ss:$0 sm:$0xff]  ;;  %v546_v32 = vld [vmem:[#allocation5 + $0xb0] sm:$0xff]   ;;  %v411_v34 = vld [vmem:[%s735_s2 + $0x1] ss:$0 sm:$0xff]  ;;  %p604_p6 = pnand %p603_p5, %p597_p2 }
  0x2f   :  { %v547_v33 = vld [vmem:[#allocation5 + $0xb8] sm:$0xff]  }
  0x30   :  { %v421_v42 = vld [vmem:[%s735_s2 + $0x2] ss:$0 sm:$0xff] }
  0x31   :  { %462 = vmatpush3.bf16.msra.mxu0 %v526_v3  ;;  %482 = vmatpush3.bf16.msra.mxu1 %v534_v8 }
  0x32   :  { %463 = vmatprep.subr.bf16.mxu0 %v628_v0  ;;  %483 = vmatprep.subr.bf16.mxu1 %v628_v0 }
  0x35   :  { %464 = vmatpush3.bf16.msra.mxu0 %v527_v5  ;;  %484 = vmatpush3.bf16.msra.mxu1 %v535_v10 }
  0x36   :  { %465 = vmatprep.subr.bf16.mxu0 %v628_v0  ;;  %485 = vmatprep.subr.bf16.mxu1 %v628_v0 }
  0x39   :  { %466 = vmatpush3.bf16.msra.mxu0 %v528_v7  ;;  %486 = vmatpush3.bf16.msra.mxu1 %v536_v14 }
  0x3a   :  { %467 = vmatprep.subr.bf16.mxu0 %v628_v0  ;;  %487 = vmatprep.subr.bf16.mxu1 %v628_v0 }
  0x3d   :  { %468 = vmatpush3.bf16.msra.mxu0 %v529_v9  ;;  %488 = vmatpush3.bf16.msra.mxu1 %v537_v15 }
  0x3e   :  { %469 = vmatprep.subr.bf16.mxu0 %v628_v0  ;;  %489 = vmatprep.subr.bf16.mxu1 %v628_v0 }
  0x41   :  { %470 = vmatpush3.bf16.msra.mxu0 %v530_v11  ;;  %490 = vmatpush3.bf16.msra.mxu1 %v538_v16 }
  0x42   :  { %471 = vmatprep.subr.bf16.mxu0 %v628_v0  ;;  %491 = vmatprep.subr.bf16.mxu1 %v628_v0 }
  0x45   :  { %472 = vmatpush3.bf16.msra.mxu0 %v531_v12  ;;  %492 = vmatpush3.bf16.msra.mxu1 %v539_v17 }
  0x46   :  { %497 = vmatprep.subr.bf16.mxu0 %v628_v0 }
  0x48   :  { %474 = vmatmul.mubr.bf16.vlgmr.msra.gmra.mrb[0].mxu0 %v42_v13 }
  0x49   :  { %513 = vmatprep.mubr.msk.bf16.mxu0 %vm629_vm0, %v628_v0  ;;  %498 = vmatpush3.bf16.msra.mxu0 %v540_v18 }
  0x4a   :  { %499 = vmatprep.subr.bf16.mxu0 %v628_v0 }
  0x4d   :  { %500 = vmatpush3.bf16.msra.mxu0 %v541_v19 }
  0x4e   :  { %501 = vmatprep.subr.bf16.mxu0 %v628_v0 }
  0x51   :  { %502 = vmatpush3.bf16.msra.mxu0 %v542_v20 }
  0x52   :  { %503 = vmatprep.subr.bf16.mxu0 %v628_v0 }
  0x55   :  { %504 = vmatpush3.bf16.msra.mxu0 %v543_v21 }
  0x56   :  { %505 = vmatprep.subr.bf16.mxu0 %v628_v0 }
  0x59   :  { %506 = vmatpush3.bf16.msra.mxu0 %v544_v30 }
  0x5a   :  { %507 = vmatprep.subr.bf16.mxu0 %v628_v0 }
  0x5d   :  { %508 = vmatpush3.bf16.msra.mxu0 %v545_v31 }
  0x5e   :  { %509 = vmatprep.subr.bf16.mxu0 %v628_v0 }
  0x61   :  { %510 = vmatpush3.bf16.msra.mxu0 %v546_v32 }
  0x62   :  { %511 = vmatprep.subr.bf16.mxu0 %v628_v0 }
  0x65   :  { %512 = vmatpush3.bf16.msra.mxu0 %v547_v33 }
 0x11b   :  { %v148_v23 = vpop.f32.mrb[0].mxu0 }
 0x11c   :  { %v149_v24 = vadd.f32 %v401_v22, %v148_v23  ;;  %v475_v25 = vpop.f32.mrb[1].mxu0 }
 0x11d   :  { %v151_v26 = vpop.f32.mrb[2].mxu0 }
 0x11e   :  { %548 = vtanh.f32 %v149_v24  ;;  %v476_v27 = vpop.f32.mrb[3].mxu0 }
 0x128   :  { %v549_v28 = vpop.eup %548 }
 0x129   :  { %v155_v29 = vpack.c.bf16 %v549_v28, %v549_v28 }
 0x12b   :  { %494 = vmatmul.mubr.bf16.vlgmr.msra.gmra.mrb[0].mxu1 %v155_v29 }
 0x1fe   :  { %v263_v35 = vpop.f32.mrb[0].mxu1 }
 0x1ff   :  { %v264_v36 = vadd.f32 %v411_v34, %v263_v35  ;;  %v495_v37 = vpop.f32.mrb[1].mxu1 }
 0x200   :  { %v266_v38 = vpop.f32.mrb[2].mxu1 }
 0x201   :  { %550 = vtanh.f32 %v264_v36  ;;  %v496_v39 = vpop.f32.mrb[3].mxu1 }
 0x20b   :  { %v551_v40 = vpop.eup %550 }
 0x20c   :  { %v270_v41 = vpack.c.bf16 %v551_v40, %v551_v40 }
 0x20e   :  { %514 = vmatmul.mubr.bf16.vlgmr.msra.gmra.mrb[4].mxu0 %v270_v41 }
 0x2e1   :  { %v378_v43 = vpop.f32.mrb[4].mxu0 }
 0x2e2   :  { %v379_v44 = vadd.f32 %v421_v42, %v378_v43  ;;  %v515_v45 = vpop.f32.mrb[5].mxu0 }
 0x2e3   :  { %v381_v46 = vpop.f32.mrb[6].mxu0 }
 0x2e4   :  { %384 = vst [vmem:[#allocation7] sm:$0xff] %v379_v44  ;;  %v516_v47 = vpop.f32.mrb[7].mxu0 }
 0x2e5   :  { %607 = shalt.err (!%p604_p6)
}
 0x2e6   :  { %s608_s2 = scalar_lea.hbm %s736_s3, 128 }
 0x2e7   :  { %p609_p7 = scmp.ne.s32.totalorder %s736_s3, %s608_s2  ;;  %p612_p8 = scmp.lt.u32.totalorder %s608_s2, %s736_s3 }
 0x2e9   :  { %p614_p9 = pnand %p612_p8, %p609_p7 }
 0x2eb   :  { %617 = shalt.err (!%p614_p9)
}
 0x2ec   :  { %394 = dma.vmem_to_hbm [thread:$0]  %s392_s16, 128, %s736_s3, [#allocation4]  }
 0x2ed   :  { %622 = dma.done.wait [#allocation4], 128  }
 0x2ee   :  { %623 = vsyncadd [#allocation4], 4294967168 }
 0x2ef   :  { %398 = vsyncpa [#allocation3], 1 }
 0x2f0   :  { %399 = vsyncpa [#allocation6], 1 }
 0x2f1   :  { %400 = vsyncpa [#allocation4], 1 }

</bundles_post_ra>
